<compile_context>
chip_gen: v7x
topology: tpu7x:2x2x1
jax: 0.10.0
libtpu: 0.0.40
codegen_flags: <defaults>
</compile_context>

<pallas_src>
import functools

import jax
import jax.numpy as jnp
from jax import lax
from jax.experimental import pallas as pl
from jax.experimental.pallas import tpu as pltpu


def _style_gram_kernel(fs_ref, ft_ref, out_ref, p_ref, *,
                       hw_total, nh_per_split, need_mask, slab_out, mxu_dtype):
    """One (batch b, hw-split s, hw-chunk h) grid step.

    fs_ref / ft_ref: (1, C, hw_tile) feature chunks (native input dtype).
    out_ref: (1, 1, 128) scalar partial         (slab_out=False)  or
             (1, 1, C, C) normalized Gram-diff  (slab_out=True).
    p_ref:   (C, C) f32 accumulator of P = (fs+ft) @ (fs-ft)^T.
    """
    s = pl.program_id(1)
    h = pl.program_id(2)

    @pl.when(h == 0)
    def _():
        p_ref[...] = jnp.zeros_like(p_ref)

    fs = fs_ref[0]                       # (C, hw_tile)
    ft = ft_ref[0]
    # Sum / difference in the input dtype (f32 inputs stay f32).
    fsum = fs + ft
    fdiff = fs - ft

    if need_mask:
        # Zero lanes past the end of H*W (ragged last chunk) and whole
        # duplicated chunks (clamped index_map when the HW split is uneven).
        hw_tile = fsum.shape[-1]
        start = (s * nh_per_split + h) * hw_tile
        lane = lax.broadcasted_iota(jnp.int32, fsum.shape, dimension=1)
        valid = lane < (hw_total - start)
        fsum = jnp.where(valid, fsum, jnp.zeros_like(fsum))
        fdiff = jnp.where(valid, fdiff, jnp.zeros_like(fdiff))

    if mxu_dtype is not None:
        fsum = fsum.astype(mxu_dtype)
        fdiff = fdiff.astype(mxu_dtype)

    # P += (fs+ft) @ (fs-ft)^T : contract the last dim of both operands
    # (transposed-RHS matmul on the MXU), f32 accumulation.
    dn = (((1,), (1,)), ((), ()))
    p_ref[...] += lax.dot_general(fsum, fdiff, dimension_numbers=dn,
                                  preferred_element_type=jnp.float32)

    @pl.when(h == nh_per_split - 1)
    def _():
        p = p_ref[...]
        # G_src - G_tgt = 0.5 * (P + P^T); fold the 1/(H*W) Gram normalization
        # in here so the partial cannot blow up in f32 for large feature maps.
        gdiff = (p + p.T) * jnp.float32(0.5 / hw_total)
        if slab_out:
            out_ref[...] = gdiff[None, None]
        else:
            ssq = jnp.sum(gdiff * gdiff)
            out_ref[...] = jnp.broadcast_to(ssq, out_ref.shape)


def _vmem_plan(C):
    """Generation-aware (input-block budget, vmem_limit) in bytes."""
    try:
        cap = int(pltpu.get_tpu_info().vmem_capacity_bytes)
    except Exception:
        cap = 64 * 1024 * 1024          # conservative fallback (v7x-sized)
    if cap <= 80 * 1024 * 1024:         # v7x-class TensorCore (64 MiB VMEM)
        input_budget = 36 * 1024 * 1024
        vmem_limit = 52 * 1024 * 1024
    else:                               # v5e / v6e (128 MiB VMEM)
        input_budget = 56 * 1024 * 1024
        vmem_limit = 100 * 1024 * 1024
    # Leave room for the resident (C, C) f32 accumulator (+ slab out blocks).
    input_budget = max(input_budget - 3 * C * C * 4, 2 * 1024 * 1024)
    return input_budget, vmem_limit


def _choose_hw_tile(C, HW, itemsize, input_budget_bytes):
    """Largest lane-aligned HW tile whose double-buffered input blocks
    (2 inputs x 2 buffers x C x tile x itemsize) fit the per-chip budget,
    balanced across chunks so tail waste is < one granule."""
    max_tile = input_budget_bytes // (4 * C * itemsize)
    granule = 256 if max_tile >= 256 else 128       # clean MXU push cadence
    max_tile = max(granule, (max_tile // granule) * granule)
    if HW <= max_tile:
        return HW                                    # single full-extent chunk
    n_chunks = pl.cdiv(HW, max_tile)
    tile = pl.cdiv(pl.cdiv(HW, n_chunks), granule) * granule
    return min(tile, max_tile)


@functools.partial(jax.jit, static_argnames=("hw_tile", "mxu_dtype"))
def style_loss(featmap_src_T, featmap_tgt_S, *, hw_tile=None, mxu_dtype=None):
    """Pallas TPU implementation of StyleLoss.forward (NCHW inputs).

    hw_tile:   optional override of the HW chunk width (multiple of 128, or
               >= H*W); default derived from the chip's VMEM capacity.
    mxu_dtype: optional in-kernel cast of the matmul operands (e.g.
               jnp.bfloat16 for full-rate MXU on v5e with large C).  The
               feature maps stay in their original dtype in HBM.
    """
    B, C, H, W = featmap_src_T.shape
    HW = H * W
    f_src = featmap_src_T.reshape(B, C, HW)
    f_tgt = featmap_tgt_S.reshape(B, C, HW)
    itemsize = jnp.dtype(f_src.dtype).itemsize

    input_budget, vmem_limit = _vmem_plan(C)
    if hw_tile is None:
        hw_tile = _choose_hw_tile(C, HW, itemsize, input_budget)
    hw_tile = min(int(hw_tile), HW)

    nh_blocks = pl.cdiv(HW, hw_tile)      # valid hw blocks in the arrays
    # Split the HW reduction over a second parallel axis only when the batch
    # axis alone cannot feed both TensorCores (v7x) -- i.e. B == 1.  The two
    # splits emit partial (C, C) Gram-diff slabs that are combined in XLA
    # (sum-of-squares is NOT additive across HW splits, the Gram diff is).
    split_hw = (B == 1) and (nh_blocks >= 2) and (C * C * 4 <= 8 * 1024 * 1024)
    ns = 2 if split_hw else 1
    nh = pl.cdiv(nh_blocks, ns)
    need_mask = (HW % hw_tile != 0) or (ns * nh != nh_blocks)

    def in_map(b, s, h):
        # Clamp duplicated trailing chunks (they are masked to zero in-kernel).
        return (b, 0, jnp.minimum(s * nh + h, nh_blocks - 1))

    kernel = functools.partial(
        _style_gram_kernel, hw_total=HW, nh_per_split=nh,
        need_mask=need_mask, slab_out=split_hw, mxu_dtype=mxu_dtype)

    if split_hw:
        out_shape = jax.ShapeDtypeStruct((B, ns, C, C), jnp.float32)
        out_spec = pl.BlockSpec((1, 1, C, C), lambda b, s, h: (b, s, 0, 0))
    else:
        out_shape = jax.ShapeDtypeStruct((B, ns, 128), jnp.float32)
        out_spec = pl.BlockSpec((1, 1, 128), lambda b, s, h: (b, s, 0))

    out = pl.pallas_call(
        kernel,
        out_shape=out_shape,
        grid_spec=pltpu.PrefetchScalarGridSpec(
            num_scalar_prefetch=0,
            grid=(B, ns, nh),
            in_specs=[
                pl.BlockSpec((1, C, hw_tile), in_map),
                pl.BlockSpec((1, C, hw_tile), in_map),
            ],
            out_specs=out_spec,
            scratch_shapes=[pltpu.VMEM((C, C), jnp.float32)],
        ),
        compiler_params=pltpu.CompilerParams(
            dimension_semantics=("parallel", "parallel", "arbitrary"),
            vmem_limit_bytes=vmem_limit,
        ),
    )(f_src, f_tgt)

    if split_hw:
        gdiff = jnp.sum(out, axis=1)              # (B, C, C) = (G_s - G_t)/HW
        return jnp.mean(gdiff * gdiff)
    # Scalar path: each per-batch partial already equals
    # sum over C*C of ((G_s - G_t)/HW)^2; only the MSE mean factor remains.
    return jnp.sum(out[:, 0, 0]) / (jnp.float32(B) * C * C)


def _style_loss_ref(featmap_src_T, featmap_tgt_S):
    B, C, H, W = featmap_src_T.shape
    f_src = featmap_src_T.reshape(B, C, H * W).astype(jnp.float32)
    f_tgt = featmap_tgt_S.reshape(B, C, H * W).astype(jnp.float32)
    hi = lax.Precision.HIGHEST
    A_src = jnp.einsum("bci,bdi->bcd", f_src, f_src, precision=hi) / (H * W)
    A_tgt = jnp.einsum("bci,bdi->bcd", f_tgt, f_tgt, precision=hi) / (H * W)
    return jnp.mean((A_src - A_tgt) ** 2)


if __name__ == "__main__":
    key = jax.random.PRNGKey(0)
    k1, k2, k3, k4 = jax.random.split(key, 4)

    # Case 1: default tiling, single HW chunk, scalar-partial output path.
    xs = jax.random.normal(k1, (2, 4, 16, 16), jnp.float32)
    xt = jax.random.normal(k2, (2, 4, 16, 16), jnp.float32)
    out1 = jax.block_until_ready(style_loss(xs, xt))
    ref1 = jax.block_until_ready(_style_loss_ref(xs, xt))
    assert jnp.allclose(out1, ref1, rtol=1e-3, atol=1e-6), (out1, ref1)

    # Case 2: ragged HW (361 = 2*128 + 105) -> multi-chunk reduction + lane mask.
    ys = jax.random.normal(k3, (2, 8, 19, 19), jnp.float32)
    yt = jax.random.normal(k4, (2, 8, 19, 19), jnp.float32)
    out2 = jax.block_until_ready(style_loss(ys, yt, hw_tile=128))
    ref2 = jax.block_until_ready(_style_loss_ref(ys, yt))
    assert jnp.allclose(out2, ref2, rtol=1e-3, atol=1e-6), (out2, ref2)

    # Case 3: B == 1 -> HW reduction split across a second parallel axis
    # (dual-TensorCore path on v7x); Gram-diff slab partials combined in XLA.
    out3 = jax.block_until_ready(style_loss(ys[:1], yt[:1], hw_tile=128))
    ref3 = jax.block_until_ready(_style_loss_ref(ys[:1], yt[:1]))
    assert jnp.allclose(out3, ref3, rtol=1e-3, atol=1e-6), (out3, ref3)

    print("KERNEL_OK")
</pallas_src>

<mosaic_0001>
module attributes {stable_mosaic.version = 11 : i64} {
  func.func @_style_gram_kernel(%arg0: i32, %arg1: i32, %arg2: i32, %arg3: memref<1x4x256xf32, #tpu.memory_space<vmem>>, %arg4: memref<1x4x256xf32, #tpu.memory_space<vmem>>, %arg5: memref<1x1x128xf32, #tpu.memory_space<vmem>>, %arg6: memref<4x4xf32, #tpu.memory_space<vmem>>) attributes {dimension_semantics = [#tpu.dimension_semantics<parallel>, #tpu.dimension_semantics<parallel>, #tpu.dimension_semantics<arbitrary>], iteration_bounds = array<i64: 2, 1, 1>, scalar_prefetch = 0 : i64, scratch_operands = 1 : i64, tpu.core_type = #tpu.core_type<tc>, window_params = [{transform_indices = @transform_0, window_bounds = array<i64: 1, 4, 256>}, {transform_indices = @transform_1, window_bounds = array<i64: 1, 4, 256>}, {transform_indices = @transform_2, window_bounds = array<i64: 1, 1, 128>}]} {
    %c0_i32 = arith.constant 0 : i32
    %0 = arith.cmpi eq, %arg2, %c0_i32 : i32
    %1 = arith.extui %0 : i1 to i32
    %c0_i32_0 = arith.constant 0 : i32
    %2 = arith.cmpi ne, %1, %c0_i32_0 : i32
    scf.if %2 {
      %cst_12 = arith.constant 0.000000e+00 : f32
      %16 = vector.broadcast %cst_12 : f32 to vector<4x4xf32>
      %c0_13 = arith.constant 0 : index
      %c0_14 = arith.constant 0 : index
      %17 = vector.load %arg6[%c0_13, %c0_14] : memref<4x4xf32, #tpu.memory_space<vmem>>, vector<4x4xf32>
      tpu.vector_store %arg6[%c0_13, %c0_14], %16 {strides = array<i32>} : memref<4x4xf32, #tpu.memory_space<vmem>>, vector<4x4xf32>,
    } else {
    }
    %c0 = arith.constant 0 : index
    %c0_1 = arith.constant 0 : index
    %c0_2 = arith.constant 0 : index
    %3 = vector.load %arg3[%c0, %c0_1, %c0_2] : memref<1x4x256xf32, #tpu.memory_space<vmem>>, vector<1x4x256xf32>
    %4 = vector.shape_cast %3 : vector<1x4x256xf32> to vector<4x256xf32>
    %c0_3 = arith.constant 0 : index
    %c0_4 = arith.constant 0 : index
    %c0_5 = arith.constant 0 : index
    %5 = vector.load %arg4[%c0_3, %c0_4, %c0_5] : memref<1x4x256xf32, #tpu.memory_space<vmem>>, vector<1x4x256xf32>
    %6 = vector.shape_cast %5 : vector<1x4x256xf32> to vector<4x256xf32>
    %7 = arith.addf %4, %6 : vector<4x256xf32>
    %8 = arith.subf %4, %6 : vector<4x256xf32>
    %c0_6 = arith.constant 0 : index
    %c0_7 = arith.constant 0 : index
    %9 = vector.load %arg6[%c0_6, %c0_7] : memref<4x4xf32, #tpu.memory_space<vmem>>, vector<4x4xf32>
    %cst = arith.constant dense<0.000000e+00> : vector<4x4xf32>
    %10 = tpu.matmul %7, %8, %cst {dimension_numbers = #tpu.dot_dimension_numbers<[1], [1], [0], [0], [0, 0, 1, 0], [], []>} : vector<4x256xf32>, vector<4x256xf32>, vector<4x4xf32> -> vector<4x4xf32>
    %11 = arith.addf %9, %10 : vector<4x4xf32>
    %c0_8 = arith.constant 0 : index
    %c0_9 = arith.constant 0 : index
    %12 = vector.load %arg6[%c0_8, %c0_9] : memref<4x4xf32, #tpu.memory_space<vmem>>, vector<4x4xf32>
    tpu.vector_store %arg6[%c0_8, %c0_9], %11 {strides = array<i32>} : memref<4x4xf32, #tpu.memory_space<vmem>>, vector<4x4xf32>,
    %c0_i32_10 = arith.constant 0 : i32
    %13 = arith.cmpi eq, %arg2, %c0_i32_10 : i32
    %14 = arith.extui %13 : i1 to i32
    %c0_i32_11 = arith.constant 0 : i32
    %15 = arith.cmpi ne, %14, %c0_i32_11 : i32
    scf.if %15 {
      %c0_12 = arith.constant 0 : index
      %c0_13 = arith.constant 0 : index
      %16 = vector.load %arg6[%c0_12, %c0_13] : memref<4x4xf32, #tpu.memory_space<vmem>>, vector<4x4xf32>
      %17 = tpu.transpose %16, [1, 0] : vector<4x4xf32> -> vector<4x4xf32>
      %18 = arith.addf %16, %17 : vector<4x4xf32>
      %cst_14 = arith.constant 0.001953125 : f32
      %19 = vector.broadcast %cst_14 : f32 to vector<4x4xf32>
      %20 = arith.mulf %18, %19 : vector<4x4xf32>
      %21 = arith.mulf %20, %20 : vector<4x4xf32>
      %22 = vector.shape_cast %21 : vector<4x4xf32> to vector<1x4x4xf32>
      %cst_15 = arith.constant dense<0.000000e+00> : vector<1xf32>
      %23 = vector.multi_reduction <add>, %22, %cst_15 [1, 2] : vector<1x4x4xf32> to vector<1xf32>
      %24 = vector.shape_cast %23 : vector<1xf32> to vector<1x1x1xf32>
      %25 = vector.extract %24[0, 0, 0] : f32 from vector<1x1x1xf32>
      %26 = vector.broadcast %25 : f32 to vector<1x1x128xf32>
      %c0_16 = arith.constant 0 : index
      %c0_17 = arith.constant 0 : index
      %c0_18 = arith.constant 0 : index
      %27 = vector.load %arg5[%c0_16, %c0_17, %c0_18] : memref<1x1x128xf32, #tpu.memory_space<vmem>>, vector<1x1x128xf32>
      tpu.vector_store %arg5[%c0_16, %c0_17, %c0_18], %26 {strides = array<i32>} : memref<1x1x128xf32, #tpu.memory_space<vmem>>, vector<1x1x128xf32>,
    } else {
    }
    return
  }
  func.func @transform_0(%arg0: i32, %arg1: i32, %arg2: i32) -> (i32, i32, i32) {
    %c1_i32 = arith.constant 1 : i32
    %0 = arith.muli %arg1, %c1_i32 : i32
    %1 = arith.addi %0, %arg2 : i32
    %c0_i32 = arith.constant 0 : i32
    %2 = arith.minsi %1, %c0_i32 : i32
    %c0_i32_0 = arith.constant 0 : i32
    %c0_i32_1 = arith.constant 0 : i32
    return %arg0, %c0_i32_0, %2 : i32, i32, i32
  }
  func.func @transform_1(%arg0: i32, %arg1: i32, %arg2: i32) -> (i32, i32, i32) {
    %c1_i32 = arith.constant 1 : i32
    %0 = arith.muli %arg1, %c1_i32 : i32
    %1 = arith.addi %0, %arg2 : i32
    %c0_i32 = arith.constant 0 : i32
    %2 = arith.minsi %1, %c0_i32 : i32
    %c0_i32_0 = arith.constant 0 : i32
    %c0_i32_1 = arith.constant 0 : i32
    return %arg0, %c0_i32_0, %2 : i32, i32, i32
  }
  func.func @transform_2(%arg0: i32, %arg1: i32, %arg2: i32) -> (i32, i32, i32) {
    %c0_i32 = arith.constant 0 : i32
    %c0_i32_0 = arith.constant 0 : i32
    return %arg0, %arg1, %c0_i32 : i32, i32, i32
  }
}

</mosaic_0001>

<bundles_post_ra>
// kernel: style_loss.1
= control target key start
LH: loop header
LB: loop body
LE: loop exit
PB: predicated region body
PF: predicated region fallthrough
CT: control target
= control target key end

     0   :  { %s574_s9 = smov 0   ;;  %s576_s10 = smov 0   ;;  %s617_s0 = inlined_call_operand.vmem [shape: f32[2,4,256], index: 0, kind: input, shape index: {}]   ;;  %s618_s1 = inlined_call_operand.vmem [shape: f32[2,4,256], index: 1, kind: input, shape index: {}]   ;;  %s619_s2 = inlined_call_operand.vmem [shape: f32[2,1,128], index: 2, kind: output, shape index: {}]  }
   0x1   :  { %s578_s11 = smov 0  }
   0x2 LB: > { %s31_s12 = sadd.s32 1, %s552_s10  ;;  %p498_p0 = scmp.ge.s32.totalorder %s556_s11, 1  ;;  %s556_s11 = sphi %s578_s11, %s12_s11   ;;  %s552_s10 = sphi %s576_s10, %s621_s10   ;;  %s548_s9 = sphi %s574_s9, %s620_s9  }
   0x3   : > { %p33_p1 = scmp.ge.s32.totalorder %s31_s12, 2  ;;  %p181_p2 = scmp.lt.s32.totalorder %s556_s11, 3 }
   0x5   : > { %s623_s12 = smov (%p33_p1, %s31_s12), 0  ;;  %p182_p3 = pnand %p498_p0, %p181_p2 }
   0x6   : > { %p227_p4 = scmp.lt.s32.totalorder (!%p182_p3), %s548_s9, 1  ;;  %vm265_vm0 = vcmask (!%p182_p3), 27648   ;;  %v558_v0 = vmov (!%p182_p3), 0.0  }
   0x7   : > { %185 = sbr.rel (%p182_p3) target bundleno = 591 (0x24f), region = 28  ;;  %266 = vst.msk [vmem:[#allocation2] sm:$0xf] (!%p182_p3), %vm265_vm0, %v558_v0 }
   0xe   : > { %s625_s9 = smov (!%p227_p4, %s548_s9), 1  ;;  %v271_v7 = vld [vmem:[#allocation2] sm:$0xf] }
   0xf   : > { %s505_s13 = sshll.u32 %s625_s9, 3  ;;  %s260_s22 = scalar_lea.vmem %s619_s2, %s625_s9 }
  0x10   : > { %s234_s16 = scalar_lea.vmem %s617_s0, %s505_s13  ;;  %s250_s19 = scalar_lea.vmem %s618_s1, %s505_s13 }
  0x11   : > { %v267_v1 = vld [vmem:[%s234_s16] sm:$0xff] }
  0x12   : > { %v268_v2 = vld [vmem:[%s250_s19] sm:$0xff] }
  0x13   : > { %v270_v3 = vsub.f32 %v267_v1, %v268_v2  ;;  %v269_v4 = vadd.f32 %v268_v2, %v267_v1 }
  0x15   : > { %v276_v5 = vcombine.high %v270_v3, %v270_v3  ;;  %v273_v6 = vcombine.high %v269_v4, %v269_v4 }
  0x17   : > { %278 = vmatprep.subr.mxu0 %v276_v5  ;;  %342 = vmatprep.mubr.f32.mxu0 %v273_v6 }
  0x18   : > { %279 = vmatpush1.xpose.msra.mxu0 %v270_v3 }
  0x1b   : > { %343 = vmatmul.mubr.f32.vlgmr.msra.gmra.mrb[0].mxu0 %v269_v4 }
  0xee   : > { %v344_v8 = vpop.f32.mrb[0].mxu0 }
  0xef   : > { %v348_v9 = vadd.f32 %v344_v8, %v271_v7  ;;  %v346_v10 = vpop.f32.mrb[1].mxu0 }
  0xf1   : > { %350 = vst.msk [vmem:[#allocation2] sm:$0xf] %vm265_vm0, %v348_v9 }
  0xf8   : > { %v354_v11 = vld [vmem:[#allocation2] sm:$0xf] }
  0xf9   : > { %355 = vxpose.xlu0.b32.start.end [1/1] (short) (narrow) %v354_v11, 8 }
 0x179   : > { %v371_v12 = vpop.trf.xlu0 }
 0x17a   : > { %v387_v13 = vadd.f32 %v371_v12, %v354_v11 }
 0x17c   : > { %v388_v14 = vmul.f32 0.001953125, %v387_v13 }
 0x17e   : > { %v389_v15 = vmul.f32 %v388_v14, %v388_v14 }
 0x180   : > { %v390_v16 = vsel %vm265_vm0, %v389_v15, 0.0 }
 0x181   : > { %391 = vadd.xlane.f32.xlu0 %v390_v16 }
 0x20e   : > { %v392_v17 = vpop.xlane.xlu0 %391 }
 0x20f   : > { %v393_v18 = vrot.slane %v392_v17, 4 }
 0x211   : > { %v394_v19 = vadd.f32 %v393_v18, %v392_v17 }
 0x213   : > { %v395_v20 = vrot.slane %v394_v19, 2 }
 0x215   : > { %v396_v21 = vadd.f32 %v395_v20, %v394_v19 }
 0x217   : > { %v397_v22 = vrot.slane %v396_v21, 1 }
 0x219   : > { %v398_v23 = vadd.f32 %v397_v22, %v396_v21 }
 0x21b   : > { %507 = vpush %v398_v23 }
 0x24c   : > { %s508_s23 = spop %507 }
 0x24d   : > { %v400_v24 = vstv %s508_s23 }
 0x24e   : > { %401 = vst [vmem:[%s260_s22] sm:$0x1] %v400_v24 }
 0x24f PF: > { %s12_s11 = sadd.s32 1, %s556_s11   ;;  %s620_s9 = smov %s552_s10 }
 0x250   : > { %p9_p5 = scmp.ge.s32.totalorder %s12_s11, 4   ;;  %s621_s10 = smov %s623_s12 }
 0x252   :  { %11 = sbr.rel (!%p9_p5) target bundleno = 2 (0x2), region = 69 }

</bundles_post_ra>
